<compile_context>
chip_gen: v7x
topology: tpu7x:2x2x1
jax: 0.10.0
libtpu: 0.0.40
codegen_flags: <defaults>
</compile_context>

<pallas_src>
import functools
import math

import jax
import jax.numpy as jnp
from jax.experimental import pallas as pl
from jax.experimental.pallas import tpu as pltpu

IGNORE_INDEX = 255


def _ce_kernel(logits_ref, labels_ref, loss_ref, part_ref, *, hw, tile_p, thresh_v):
    # logits_ref: (1, C, TP) native float dtype  (classes on sublanes, pixels on lanes)
    # labels_ref: (1, 1, TP) native int dtype
    # loss_ref:   (1, 1, TP) f32 per-pixel CE loss (0 for ignored pixels)
    # part_ref:   (1, 1, 1, 128) f32 per-tile partials:
    #             lane 0 = n_valid, lane 1 = count(loss > thresh), lane 2 = sum(loss > thresh)
    x = logits_ref[...].astype(jnp.float32)                         # (1, C, TP)
    lbl = labels_ref[...].astype(jnp.int32)                         # (1, 1, TP)

    # numerically stable log-sum-exp over the class (sublane) axis; reuse (x - m)
    m = jnp.max(x, axis=1, keepdims=True)                           # (1, 1, TP)
    xm = x - m                                                      # (1, C, TP)
    lse = jnp.log(jnp.sum(jnp.exp(xm), axis=1, keepdims=True))      # shifted lse

    # target-class (shifted) logit via masked select -- no onehot f32 cast/multiply
    iota_c = jax.lax.broadcasted_iota(jnp.int32, xm.shape, 1)       # (1, C, TP)
    tgt = jnp.sum(jnp.where(iota_c == lbl, xm, 0.0), axis=1, keepdims=True)

    valid = lbl != IGNORE_INDEX                                     # (1, 1, TP)
    loss = jnp.where(valid, lse - tgt, 0.0)                         # ignored -> 0
    loss_ref[...] = loss

    # --- fused per-tile partial reductions (mask out-of-bounds tail lanes) ---
    pix = (pl.program_id(1) * tile_p
           + jax.lax.broadcasted_iota(jnp.int32, loss.shape, 2))    # global pixel idx
    in_bounds = pix < hw
    valid_ib = valid & in_bounds
    gt = (loss > thresh_v) & in_bounds   # ignored pixels have loss 0 -> excluded for thresh>0

    nv = jnp.sum(valid_ib.astype(jnp.float32), axis=2, keepdims=True)       # (1,1,1)
    cnt = jnp.sum(gt.astype(jnp.float32), axis=2, keepdims=True)            # (1,1,1)
    sgt = jnp.sum(jnp.where(gt, loss, 0.0), axis=2, keepdims=True)          # (1,1,1)

    lane = jax.lax.broadcasted_iota(jnp.int32, (1, 1, 1, 128), 3)
    part_ref[...] = jnp.where(lane == 0, nv,
                      jnp.where(lane == 1, cnt,
                        jnp.where(lane == 2, sgt, 0.0)))


def _per_pixel_ce(logits_ncp, labels_n1p, *, thresh_v, max_tile=32768):
    """Per-pixel CE loss + fused per-tile partial sums via Pallas.

    logits_ncp: (N, C, HW) any float dtype (upcast in-kernel)
    labels_n1p: (N, 1, HW) any int dtype   (upcast in-kernel)
    Returns (loss (N,1,HW) f32, partials (N, num_tiles, 1, 128) f32).
    """
    N, C, HW = logits_ncp.shape
    # lane-dense tile over the pixel axis; multiple of 128, capped at max_tile
    tile_p = min(max_tile, ((HW + 127) // 128) * 128)
    num_tiles = pl.cdiv(HW, tile_p)
    # v7x has 2 TensorCores; make sure the parallel grid has >= 2 steps.
    if N * num_tiles < 2 and tile_p > 128:
        tile_p = ((tile_p // 2 + 127) // 128) * 128
        num_tiles = pl.cdiv(HW, tile_p)
    grid = (N, num_tiles)

    kernel = functools.partial(_ce_kernel, hw=HW, tile_p=tile_p, thresh_v=thresh_v)

    return pl.pallas_call(
        kernel,
        out_shape=(
            jax.ShapeDtypeStruct((N, 1, HW), jnp.float32),
            jax.ShapeDtypeStruct((N, num_tiles, 1, 128), jnp.float32),
        ),
        grid_spec=pltpu.PrefetchScalarGridSpec(
            num_scalar_prefetch=0,
            grid=grid,
            in_specs=[
                pl.BlockSpec((1, C, tile_p), lambda n, i: (n, 0, i)),
                pl.BlockSpec((1, 1, tile_p), lambda n, i: (n, 0, i)),
            ],
            out_specs=[
                pl.BlockSpec((1, 1, tile_p), lambda n, i: (n, 0, i)),
                pl.BlockSpec((1, 1, 1, 128), lambda n, i: (n, i, 0, 0)),
            ],
        ),
        compiler_params=pltpu.CompilerParams(
            dimension_semantics=("parallel", "parallel"),
            # 48 MiB: enough for 32K-pixel tiles (double-buffered logits blocks
            # + (C, tile_p) f32 temps), still safe on v7x's 64 MiB VMEM per TC.
            vmem_limit_bytes=48 * 1024 * 1024,
        ),
    )(logits_ncp, labels_n1p)


@functools.partial(jax.jit, static_argnames=("thresh",))
def ohem_ce_loss(logits_nchw, labels_nhw, thresh=0.7):
    """Matches PyTorch OhemCELoss.forward semantics."""
    N, C, H, W = logits_nchw.shape
    HW = H * W
    P = N * HW
    thresh_v = -math.log(thresh)  # python float (thresh is static)

    # Free reshapes only: no transpose, no dtype casts (upcasts happen in-kernel).
    logits_ncp = logits_nchw.reshape(N, C, HW)
    labels_n1p = labels_nhw.reshape(N, 1, HW)

    loss_n1p, partials = _per_pixel_ce(logits_ncp, labels_n1p, thresh_v=thresh_v)
    loss = loss_n1p.reshape(-1)                                     # (P,)

    # Fused scalar partials (per-tile values are exact small integers in f32).
    n_valid = jnp.sum(partials[..., 0].astype(jnp.int32))
    count_gt = jnp.sum(partials[..., 1].astype(jnp.int32))
    sum_gt = jnp.sum(partials[..., 2])
    n_min = n_valid // 16                                           # traced scalar

    # NOTE: max(count_gt, 1) / max(n_min, 1) guards return 0.0 for empty
    # selections where torch's .mean() would return NaN (intentional).
    mean_gt = sum_gt / jnp.maximum(count_gt, 1).astype(jnp.float32)

    # Exact branch decision:  sorted_desc[n_min] > thresh  <=>  count(loss > thresh) > n_min
    take_gt = count_gt > n_min

    # Branch B only: mean of the top n_min losses (static k upper bound).
    k_max = min(P // 16 + 1, P)

    def _branch_top(loss_flat):
        top_vals = jax.lax.top_k(loss_flat, k_max)[0]               # descending
        idx = jnp.arange(k_max)
        return (jnp.sum(jnp.where(idx < n_min, top_vals, 0.0))
                / jnp.maximum(n_min, 1).astype(jnp.float32))

    return jax.lax.cond(take_gt, lambda _: mean_gt, _branch_top, loss)


def _reference(logits_nchw, labels_nhw, thresh=0.7):
    """Pure-JAX reference mirroring torch semantics, for a sanity check."""
    N, C, H, W = logits_nchw.shape
    x = jnp.transpose(logits_nchw, (0, 2, 3, 1)).reshape(-1, C).astype(jnp.float32)
    lbl = labels_nhw.reshape(-1).astype(jnp.int32)
    logp = jax.nn.log_softmax(x, axis=-1)
    safe_lbl = jnp.where(lbl == IGNORE_INDEX, 0, lbl)
    nll = -jnp.take_along_axis(logp, safe_lbl[:, None], axis=-1)[:, 0]
    loss = jnp.where(lbl == IGNORE_INDEX, 0.0, nll)
    thresh_v = -jnp.log(jnp.float32(thresh))
    n_min = jnp.sum(lbl != IGNORE_INDEX) // 16
    s = jnp.sort(loss)[::-1]
    kth = s[n_min]
    gt = loss > thresh_v
    mean_gt = jnp.sum(jnp.where(gt, loss, 0.0)) / jnp.maximum(jnp.sum(gt), 1)
    mean_top = (jnp.sum(jnp.where(jnp.arange(loss.shape[0]) < n_min, s, 0.0))
                / jnp.maximum(n_min, 1))
    return jnp.where(kth > thresh_v, mean_gt, mean_top)


if __name__ == "__main__":
    key = jax.random.PRNGKey(0)
    k1, k2, k3 = jax.random.split(key, 3)

    # small shapes consistent with the module (19 classes, ignore label 255)
    N, C, H, W = 2, 19, 16, 16
    logits = jax.random.normal(k1, (N, C, H, W), dtype=jnp.float32) * 2.0
    labels = jax.random.randint(k2, (N, H, W), 0, C).astype(jnp.int32)
    # sprinkle some ignore pixels
    ignore_mask = jax.random.uniform(k3, (N, H, W)) < 0.1
    labels = jnp.where(ignore_mask, IGNORE_INDEX, labels)

    out = ohem_ce_loss(logits, labels, thresh=0.7)
    out = jax.block_until_ready(out)

    ref = _reference(logits, labels, thresh=0.7)
    assert jnp.allclose(out, ref, rtol=1e-5, atol=1e-5), (out, ref)

    print("KERNEL_OK")
</pallas_src>

<mosaic_0001>
module attributes {stable_mosaic.version = 11 : i64} {
  func.func @_ce_kernel(%arg0: i32, %arg1: i32, %arg2: memref<1x19x256xf32, #tpu.memory_space<vmem>>, %arg3: memref<1x1x256xi32, #tpu.memory_space<vmem>>, %arg4: memref<1x1x256xf32, #tpu.memory_space<vmem>>, %arg5: memref<1x1x1x128xf32, #tpu.memory_space<vmem>>) attributes {dimension_semantics = [#tpu.dimension_semantics<parallel>, #tpu.dimension_semantics<parallel>], iteration_bounds = array<i64: 2, 1>, scalar_prefetch = 0 : i64, scratch_operands = 0 : i64, tpu.core_type = #tpu.core_type<tc>, window_params = [{transform_indices = @transform_0, window_bounds = array<i64: 1, 19, 256>}, {transform_indices = @transform_1, window_bounds = array<i64: 1, 1, 256>}, {transform_indices = @transform_2, window_bounds = array<i64: 1, 1, 256>}, {transform_indices = @transform_3, window_bounds = array<i64: 1, 1, 1, 128>}]} {
    %c0 = arith.constant 0 : index
    %c0_0 = arith.constant 0 : index
    %c0_1 = arith.constant 0 : index
    %0 = vector.load %arg2[%c0, %c0_0, %c0_1] : memref<1x19x256xf32, #tpu.memory_space<vmem>>, vector<1x19x256xf32>
    %c0_2 = arith.constant 0 : index
    %c0_3 = arith.constant 0 : index
    %c0_4 = arith.constant 0 : index
    %1 = vector.load %arg3[%c0_2, %c0_3, %c0_4] : memref<1x1x256xi32, #tpu.memory_space<vmem>>, vector<1x1x256xi32>
    %cst = arith.constant dense<0xFF800000> : vector<1x256xf32>
    %2 = vector.multi_reduction <maximumf>, %0, %cst [1] : vector<1x19x256xf32> to vector<1x256xf32>
    %3 = vector.shape_cast %2 : vector<1x256xf32> to vector<1x1x256xf32>
    %4 = vector.broadcast %3 : vector<1x1x256xf32> to vector<1x19x256xf32>
    %5 = arith.subf %0, %4 : vector<1x19x256xf32>
    %6 = math.exp %5 : vector<1x19x256xf32>
    %cst_5 = arith.constant dense<0.000000e+00> : vector<1x256xf32>
    %7 = vector.multi_reduction <add>, %6, %cst_5 [1] : vector<1x19x256xf32> to vector<1x256xf32>
    %8 = vector.shape_cast %7 : vector<1x256xf32> to vector<1x1x256xf32>
    %9 = math.log %8 : vector<1x1x256xf32>
    %10 = tpu.iota {dimensions = array<i32: 1>} : vector<1x19x256xi32>
    %11 = vector.broadcast %1 : vector<1x1x256xi32> to vector<1x19x256xi32>
    %12 = arith.cmpi eq, %10, %11 : vector<1x19x256xi32>
    %cst_6 = arith.constant 0.000000e+00 : f32
    %13 = vector.broadcast %cst_6 : f32 to vector<1x19x256xf32>
    %14 = arith.select %12, %5, %13 : vector<1x19x256xi1>, vector<1x19x256xf32>
    %cst_7 = arith.constant dense<0.000000e+00> : vector<1x256xf32>
    %15 = vector.multi_reduction <add>, %14, %cst_7 [1] : vector<1x19x256xf32> to vector<1x256xf32>
    %16 = vector.shape_cast %15 : vector<1x256xf32> to vector<1x1x256xf32>
    %c255_i32 = arith.constant 255 : i32
    %17 = vector.broadcast %c255_i32 : i32 to vector<1x1x256xi32>
    %18 = arith.cmpi ne, %1, %17 : vector<1x1x256xi32>
    %19 = arith.subf %9, %16 : vector<1x1x256xf32>
    %cst_8 = arith.constant 0.000000e+00 : f32
    %20 = vector.broadcast %cst_8 : f32 to vector<1x1x256xf32>
    %21 = arith.select %18, %19, %20 : vector<1x1x256xi1>, vector<1x1x256xf32>
    %c0_9 = arith.constant 0 : index
    %c0_10 = arith.constant 0 : index
    %c0_11 = arith.constant 0 : index
    %22 = vector.load %arg4[%c0_9, %c0_10, %c0_11] : memref<1x1x256xf32, #tpu.memory_space<vmem>>, vector<1x1x256xf32>
    tpu.vector_store %arg4[%c0_9, %c0_10, %c0_11], %21 {strides = array<i32>} : memref<1x1x256xf32, #tpu.memory_space<vmem>>, vector<1x1x256xf32>,
    %c256_i32 = arith.constant 256 : i32
    %23 = arith.muli %arg1, %c256_i32 : i32
    %24 = tpu.iota {dimensions = array<i32: 2>} : vector<1x1x256xi32>
    %25 = vector.broadcast %23 : i32 to vector<1x1x256xi32>
    %26 = arith.addi %25, %24 : vector<1x1x256xi32>
    %c256_i32_12 = arith.constant 256 : i32
    %27 = vector.broadcast %c256_i32_12 : i32 to vector<1x1x256xi32>
    %28 = arith.cmpi slt, %26, %27 : vector<1x1x256xi32>
    %29 = arith.andi %18, %28 : vector<1x1x256xi1>
    %cst_13 = arith.constant 0.356674939 : f32
    %30 = vector.broadcast %cst_13 : f32 to vector<1x1x256xf32>
    %31 = arith.cmpf ogt, %21, %30 : vector<1x1x256xf32>
    %32 = arith.andi %31, %28 : vector<1x1x256xi1>
    %33 = arith.extui %29 : vector<1x1x256xi1> to vector<1x1x256xi32>
    %34 = arith.sitofp %33 : vector<1x1x256xi32> to vector<1x1x256xf32>
    %cst_14 = arith.constant dense<0.000000e+00> : vector<1x1xf32>
    %35 = vector.multi_reduction <add>, %34, %cst_14 [2] : vector<1x1x256xf32> to vector<1x1xf32>
    %36 = vector.shape_cast %35 : vector<1x1xf32> to vector<1x1x1xf32>
    %37 = arith.extui %32 : vector<1x1x256xi1> to vector<1x1x256xi32>
    %38 = arith.sitofp %37 : vector<1x1x256xi32> to vector<1x1x256xf32>
    %cst_15 = arith.constant dense<0.000000e+00> : vector<1x1xf32>
    %39 = vector.multi_reduction <add>, %38, %cst_15 [2] : vector<1x1x256xf32> to vector<1x1xf32>
    %40 = vector.shape_cast %39 : vector<1x1xf32> to vector<1x1x1xf32>
    %cst_16 = arith.constant 0.000000e+00 : f32
    %41 = vector.broadcast %cst_16 : f32 to vector<1x1x256xf32>
    %42 = arith.select %32, %21, %41 : vector<1x1x256xi1>, vector<1x1x256xf32>
    %cst_17 = arith.constant dense<0.000000e+00> : vector<1x1xf32>
    %43 = vector.multi_reduction <add>, %42, %cst_17 [2] : vector<1x1x256xf32> to vector<1x1xf32>
    %44 = vector.shape_cast %43 : vector<1x1xf32> to vector<1x1x1xf32>
    %45 = tpu.iota {dimensions = array<i32: 3>} : vector<1x1x1x128xi32>
    %c0_i32 = arith.constant 0 : i32
    %46 = vector.broadcast %c0_i32 : i32 to vector<1x1x1x128xi32>
    %47 = arith.cmpi eq, %45, %46 : vector<1x1x1x128xi32>
    %c1_i32 = arith.constant 1 : i32
    %48 = vector.broadcast %c1_i32 : i32 to vector<1x1x1x128xi32>
    %49 = arith.cmpi eq, %45, %48 : vector<1x1x1x128xi32>
    %c2_i32 = arith.constant 2 : i32
    %50 = vector.broadcast %c2_i32 : i32 to vector<1x1x1x128xi32>
    %51 = arith.cmpi eq, %45, %50 : vector<1x1x1x128xi32>
    %cst_18 = arith.constant 0.000000e+00 : f32
    %52 = vector.shape_cast %44 : vector<1x1x1xf32> to vector<1x1x1x1xf32>
    %53 = vector.broadcast %52 : vector<1x1x1x1xf32> to vector<1x1x1x128xf32>
    %54 = vector.broadcast %cst_18 : f32 to vector<1x1x1x128xf32>
    %55 = arith.select %51, %53, %54 : vector<1x1x1x128xi1>, vector<1x1x1x128xf32>
    %56 = vector.shape_cast %40 : vector<1x1x1xf32> to vector<1x1x1x1xf32>
    %57 = vector.broadcast %56 : vector<1x1x1x1xf32> to vector<1x1x1x128xf32>
    %58 = arith.select %49, %57, %55 : vector<1x1x1x128xi1>, vector<1x1x1x128xf32>
    %59 = vector.shape_cast %36 : vector<1x1x1xf32> to vector<1x1x1x1xf32>
    %60 = vector.broadcast %59 : vector<1x1x1x1xf32> to vector<1x1x1x128xf32>
    %61 = arith.select %47, %60, %58 : vector<1x1x1x128xi1>, vector<1x1x1x128xf32>
    %c0_19 = arith.constant 0 : index
    %c0_20 = arith.constant 0 : index
    %c0_21 = arith.constant 0 : index
    %c0_22 = arith.constant 0 : index
    %62 = vector.load %arg5[%c0_19, %c0_20, %c0_21, %c0_22] : memref<1x1x1x128xf32, #tpu.memory_space<vmem>>, vector<1x1x1x128xf32>
    tpu.vector_store %arg5[%c0_19, %c0_20, %c0_21, %c0_22], %61 {strides = array<i32>} : memref<1x1x1x128xf32, #tpu.memory_space<vmem>>, vector<1x1x1x128xf32>,
    return
  }
  func.func @transform_0(%arg0: i32, %arg1: i32) -> (i32, i32, i32) {
    %c0_i32 = arith.constant 0 : i32
    %c0_i32_0 = arith.constant 0 : i32
    return %arg0, %c0_i32, %arg1 : i32, i32, i32
  }
  func.func @transform_1(%arg0: i32, %arg1: i32) -> (i32, i32, i32) {
    %c0_i32 = arith.constant 0 : i32
    %c0_i32_0 = arith.constant 0 : i32
    return %arg0, %c0_i32, %arg1 : i32, i32, i32
  }
  func.func @transform_2(%arg0: i32, %arg1: i32) -> (i32, i32, i32) {
    %c0_i32 = arith.constant 0 : i32
    %c0_i32_0 = arith.constant 0 : i32
    return %arg0, %c0_i32, %arg1 : i32, i32, i32
  }
  func.func @transform_3(%arg0: i32, %arg1: i32) -> (i32, i32, i32, i32) {
    %c0_i32 = arith.constant 0 : i32
    %c0_i32_0 = arith.constant 0 : i32
    %c0_i32_1 = arith.constant 0 : i32
    return %arg0, %arg1, %c0_i32, %c0_i32_0 : i32, i32, i32, i32
  }
}

</mosaic_0001>

<bundles_post_ra>
// kernel: ohem_ce_loss.1
= control target key start
LH: loop header
LB: loop body
LE: loop exit
PB: predicated region body
PF: predicated region fallthrough
CT: control target
= control target key end

     0   :  { %s718_s12 = smov 0   ;;  %s720_s13 = smov 0   ;;  %s826_s0 = inlined_call_operand.vmem [shape: f32[2,19,256], index: 0, kind: input, shape index: {}]   ;;  %s827_s1 = inlined_call_operand.vmem [shape: s32[2,1,256], index: 1, kind: input, shape index: {}]   ;;  %s828_s2 = inlined_call_operand.vmem [shape: f32[2,1,256], index: 2, kind: output, shape index: {0}]   ;;  %s829_s3 = inlined_call_operand.vmem [shape: f32[2,1,1,128], index: 3, kind: output, shape index: {1}]  }
   0x1   :  { %s722_s14 = smov 0  }
   0x2 LB: > { %s26_s15 = sadd.s32 1, %s689_s13  ;;  %p619_p0 = scmp.ge.s32.totalorder %s693_s14, 1  ;;  %s693_s14 = sphi %s722_s14, %s14_s14   ;;  %s689_s13 = sphi %s720_s13, %s831_s13   ;;  %s685_s12 = sphi %s718_s12, %s830_s12  }
   0x3   : > { %p28_p1 = scmp.ge.s32.totalorder %s26_s15, 2  ;;  %p179_p2 = scmp.lt.s32.totalorder %s693_s14, 3 }
   0x5   : > { %s833_s15 = smov (%p28_p1, %s26_s15), 0  ;;  %p180_p3 = pnand %p619_p0, %p179_p2 }
   0x6   : > { %p225_p4 = scmp.lt.s32.totalorder (!%p180_p3), %s685_s12, 1  ;;  %v324_v0 = vlaneseq (!%p180_p3)  ;;  %v695_v1 = vmov (!%p180_p3), 1966171168   ;;  %v696_v5 = vmov (!%p180_p3), 1   ;;  %vm265_vm0 = vcmask (!%p180_p3), 1042432  }
   0x7   : > { %183 = sbr.rel (%p180_p3) target bundleno = 251 (0xfb), region = 28  ;;  %v373_v2 = vunpack.c.l.s4 (!%p180_p3), %v695_v1  ;;  %v404_v6 = vcombine.low (!%p180_p3), %v696_v5, %v696_v5  ;;  %v697_v27 = vmov (!%p180_p3), 0.0   ;;  %vm436_vm4 = vcmask (!%p180_p3), 1040384  }
   0x8   : > { %v739_v3 = vshrl.u32 (!%p180_p3), %v324_v0, 7  ;;  %vm390_vm11 = vcmp.lt.s32.totalorder (!%p180_p3), %v324_v0, 256 }
   0x9   : > { %v374_v4 = vunpack.c.0.s8 (!%p180_p3), %v373_v2 }
   0xa   : > { %v765_v25 = vsub.s32 (!%p180_p3), 0, %v739_v3  ;;  %v768_v26 = vsub.s32 (!%p180_p3), 1, %v739_v3  ;;  %v326_v56 = vadd.s32 (!%p180_p3), 8, %v739_v3  ;;  %v327_v58 = vadd.s32 (!%p180_p3), 16, %v739_v3 }
   0xb   : > { %v743_v7 = vsub.s32 (!%p180_p3), %v374_v4, %v739_v3 }
   0xd   : > { %v411_v10 = vrot.slane (!%p180_p3), %v404_v6, %v743_v7 }
   0xe   : > { %s835_s12 = smov (!%p225_p4, %s685_s12), 1 }
   0xf   : > { %s627_s16 = smul.u32 48, %s835_s12  ;;  %s621_s20 = sshll.u32 %s835_s12, 1  ;;  %v758_v19 = vrot.slane %v411_v10, %v743_v7 }
  0x10   : > { %s241_s23 = scalar_lea.vmem %s827_s1, %s621_s20  ;;  %s250_s26 = scalar_lea.vmem %s828_s2, %s621_s20 }
  0x11   : > { %s232_s19 = scalar_lea.vmem %s826_s0, %s627_s16  ;;  %v760_v20 = vld [vmem:[%s241_s23] sm:$0x3]  ;;  %vm419_vm2 = vcmp.ne.s32.totalorder %v758_v19, 0  ;;  %s257_s29 = scalar_lea.vmem %s829_s3, %s835_s12 }
  0x12   : > { %v258_v8 = vld [vmem:[%s232_s19] sm:$0xff]  ;;  %v259_v9 = vld [vmem:[%s232_s19 + $0x8] sm:$0xff]  ;;  %v260_v13 = vld [vmem:[%s232_s19 + $0x10] sm:$0xff]  ;;  %vm366_vm1 = vcmp.ne.s32.totalorder %v760_v20, 255  ;;  %v331_v57 = vrot.slane %v760_v20, %v765_v25  ;;  %v335_v59 = vrot.slane %v760_v20, %v768_v26 }
  0x13   : > { %v262_v11 = vld [vmem:[%s232_s19 + $0x20] sm:$0x7]  ;;  %v263_v12 = vld [vmem:[%s232_s19 + $0x28] sm:$0x7]  ;;  %v261_v14 = vld [vmem:[%s232_s19 + $0x18] sm:$0xff] }
  0x14   : > { %v266_v15 = vsel %vm265_vm0, %v262_v11, -inf  ;;  %v275_v16 = vsel %vm265_vm0, %v263_v12, -inf  ;;  %vm420_vm3 = vmand %vm366_vm1, %vm419_vm2  ;;  %vm336_vm5 = vcmp.eq.s32.totalorder %v739_v3, %v331_v57  ;;  %vm338_vm6 = vcmp.eq.s32.totalorder %v326_v56, %v331_v57 }
  0x15   : > { %v267_v17 = vmax.f32 %v258_v8, %v266_v15  ;;  %v276_v18 = vmax.f32 %v259_v9, %v275_v16  ;;  %v623_v28 = vsel %vm420_vm3, 1.0, %v697_v27  ;;  %vm337_vm7 = vcmp.eq.s32.totalorder %v739_v3, %v335_v59 }
  0x16   : > { %v429_v31 = vrot.slane %v623_v28, %v765_v25  ;;  %v433_v32 = vrot.slane %v623_v28, %v768_v26  ;;  %vm339_vm8 = vcmp.eq.s32.totalorder %v326_v56, %v335_v59  ;;  %vm340_vm9 = vcmp.eq.s32.totalorder %v327_v58, %v331_v57 }
  0x17   : > { %v268_v21 = vmax.f32 %v267_v17, %v260_v13  ;;  %v277_v22 = vmax.f32 %v276_v18, %v261_v14  ;;  %vm341_vm10 = vcmp.eq.s32.totalorder %v327_v58, %v335_v59 }
  0x18   : > { %v437_v35 = vsel %vm436_vm4, %v429_v31, 0.0  ;;  %v438_v36 = vsel %vm436_vm4, %v433_v32, 0.0 }
  0x19   : > { %v269_v23 = vrot.slane %v268_v21, 4  ;;  %v278_v24 = vrot.slane %v277_v22, 4  ;;  %v439_v37 = vadd.f32 %v438_v36, %v437_v35 }
  0x1b   : > { %v270_v29 = vmax.f32 %v268_v21, %v269_v23  ;;  %v279_v30 = vmax.f32 %v277_v22, %v278_v24  ;;  %440 = vadd.xlane.f32.xlu1 %v439_v37 }
  0x1d   : > { %v271_v33 = vrot.slane %v270_v29, 2  ;;  %v280_v34 = vrot.slane %v279_v30, 2 }
  0x1f   : > { %v272_v38 = vmax.f32 %v270_v29, %v271_v33  ;;  %v281_v39 = vmax.f32 %v279_v30, %v280_v34 }
  0x21   : > { %v273_v40 = vrot.slane %v272_v38, 1  ;;  %v282_v41 = vrot.slane %v281_v39, 1 }
  0x23   : > { %v274_v42 = vmax.f32 %v272_v38, %v273_v40  ;;  %v283_v43 = vmax.f32 %v281_v39, %v282_v41 }
  0x25   : > { %v284_v44 = vsub.f32 %v258_v8, %v274_v42  ;;  %v285_v45 = vsub.f32 %v259_v9, %v283_v43  ;;  %v286_v46 = vsub.f32 %v260_v13, %v274_v42  ;;  %v287_v47 = vsub.f32 %v261_v14, %v283_v43 }
  0x26   : > { %v288_v48 = vsub.f32 %v262_v11, %v274_v42  ;;  %v289_v49 = vsub.f32 %v263_v12, %v283_v43 }
  0x27   : > { %v290_v50 = vmul.f32 1.442695, %v284_v44  ;;  %v292_v51 = vmul.f32 1.442695, %v285_v45  ;;  %v294_v52 = vmul.f32 1.442695, %v286_v46 }
  0x28   : > { %v296_v53 = vmul.f32 1.442695, %v287_v47  ;;  %v298_v54 = vmul.f32 1.442695, %v288_v48  ;;  %v300_v55 = vmul.f32 1.442695, %v289_v49 }
  0x29   : > { %655 = vpow2.f32 %v290_v50  ;;  %v342_v60 = vsel %vm336_vm5, %v284_v44, 0.0  ;;  %v344_v61 = vsel %vm338_vm6, %v286_v46, 0.0  ;;  %v343_v62 = vsel %vm337_vm7, %v285_v45, 0.0 }
  0x2a   : > { %657 = vpow2.f32 %v292_v51  ;;  %v345_v63 = vsel %vm339_vm8, %v287_v47, 0.0  ;;  %v346_v1 = vsel %vm340_vm9, %v288_v48, 0.0  ;;  %v347_v4 = vsel %vm341_vm10, %v289_v49, 0.0 }
  0x2b   : > { %659 = vpow2.f32 %v294_v52  ;;  %v348_v6 = vadd.f32 %v344_v61, %v342_v60  ;;  %v349_v9 = vsel %vm265_vm0, %v346_v1, 0.0  ;;  %v357_v10 = vadd.f32 %v345_v63, %v343_v62 }
  0x2c   : > { %661 = vpow2.f32 %v296_v53  ;;  %v358_v3 = vsel %vm265_vm0, %v347_v4, 0.0 }
  0x2d   : > { %663 = vpow2.f32 %v298_v54  ;;  %v350_v17 = vadd.f32 %v349_v9, %v348_v6  ;;  %v359_v22 = vadd.f32 %v358_v3, %v357_v10 }
  0x2e   : > { %665 = vpow2.f32 %v300_v55 }
  0x2f   : > { %v351_v29 = vrot.slane %v350_v17, 4  ;;  %v360_v31 = vrot.slane %v359_v22, 4 }
  0x31   : > { %v352_v35 = vadd.f32 %v351_v29, %v350_v17  ;;  %v361_v37 = vadd.f32 %v360_v31, %v359_v22 }
  0x33   : > { %v656_v2 = vpop.eup %655  ;;  %v353_v41 = vrot.slane %v352_v35, 2  ;;  %v362_v43 = vrot.slane %v361_v37, 2 }
  0x34   : > { %v658_v5 = vpop.eup %657 }
  0x35   : > { %v660_v8 = vpop.eup %659  ;;  %v354_v45 = vadd.f32 %v353_v41, %v352_v35  ;;  %v363_v46 = vadd.f32 %v362_v43, %v361_v37 }
  0x36   : > { %v662_v11 = vpop.eup %661  ;;  %v302_v12 = vadd.f32 %v660_v8, %v656_v2  ;;  %v395_v8 = vand.u32 127, %v324_v0 }
  0x37   : > { %v664_v13 = vpop.eup %663  ;;  %v311_v14 = vadd.f32 %v662_v11, %v658_v5  ;;  %v355_v47 = vrot.slane %v354_v45, 1  ;;  %v364_v48 = vrot.slane %v363_v46, 1 }
  0x38   : > { %v666_v15 = vpop.eup %665  ;;  %v303_v16 = vsel %vm265_vm0, %v664_v13, 0.0  ;;  %vm479_vm14 = vcmp.eq.s32.totalorder %v395_v8, 2  ;;  %vm478_vm15 = vcmp.eq.s32.totalorder %v395_v8, 1 }
  0x39   : > { %v304_v18 = vadd.f32 %v303_v16, %v302_v12  ;;  %v312_v21 = vsel %vm265_vm0, %v666_v15, 0.0  ;;  %v356_v49 = vadd.f32 %v355_v47, %v354_v45  ;;  %v365_v51 = vadd.f32 %v364_v48, %v363_v46 }
  0x3a   : > { %v313_v23 = vadd.f32 %v312_v21, %v311_v14  ;;  %vm477_vm0 = vcmp.eq.s32.totalorder %v395_v8, 0 }
  0x3b   : > { %v305_v24 = vrot.slane %v304_v18, 4 }
  0x3c   : > { %v314_v28 = vrot.slane %v313_v23, 4 }
  0x3d   : > { %v306_v30 = vadd.f32 %v305_v24, %v304_v18 }
  0x3e   : > { %v315_v32 = vadd.f32 %v314_v28, %v313_v23 }
  0x3f   : > { %v307_v33 = vrot.slane %v306_v30, 2 }
  0x40   : > { %v316_v34 = vrot.slane %v315_v32, 2 }
  0x41   : > { %v308_v36 = vadd.f32 %v307_v33, %v306_v30 }
  0x42   : > { %v317_v38 = vadd.f32 %v316_v34, %v315_v32 }
  0x43   : > { %v309_v39 = vrot.slane %v308_v36, 1 }
  0x44   : > { %v318_v40 = vrot.slane %v317_v38, 1 }
  0x45   : > { %v310_v42 = vadd.f32 %v309_v39, %v308_v36 }
  0x46   : > { %v319_v44 = vadd.f32 %v318_v40, %v317_v38 }
  0x47   : > { %667 = vlog2.f32 %v310_v42 }
  0x48   : > { %669 = vlog2.f32 %v319_v44 }
  0x51   : > { %v668_v50 = vpop.eup %667 }
  0x52   : > { %v670_v52 = vpop.eup %669  ;;  %v321_v53 = vmul.f32 0.6931472, %v668_v50 }
  0x53   : > { %v323_v54 = vmul.f32 0.6931472, %v670_v52 }
  0x54   : > { %v367_v55 = vsub.f32 %v321_v53, %v356_v49 }
  0x55   : > { %v368_v56 = vsub.f32 %v323_v54, %v365_v51 }
  0x57   : > { %v371_v57 = vcombine.low %v367_v55, %v368_v56 }
  0x59   : > { %v378_v58 = vrot.slane %v371_v57, %v743_v7 }
  0x5b   : > { %v385_v59 = vrot.slane %v378_v58, %v743_v7 }
  0x5d   : > { %v387_v60 = vsel %vm366_vm1, %v385_v59, 0.0 }
  0x5e   : > { %vm421_vm12 = vcmp.gt.f32.partialorder %v387_v60, 0.35667494  ;;  %392 = vst.msk [vmem:[%s250_s26] sm:$0x3] %vm390_vm11, %v387_v60 }
  0x5f   : > { %vm422_vm13 = vmand %vm421_vm12, %vm419_vm2 }
  0x60   : > { %v460_v61 = vsel %vm422_vm13, %v387_v60, 0.0  ;;  %v624_v62 = vsel %vm422_vm13, 1.0, %v697_v27 }
  0x61   : > { %v465_v63 = vrot.slane %v460_v61, %v765_v25  ;;  %v469_v1 = vrot.slane %v460_v61, %v768_v26  ;;  %v448_v2 = vrot.slane %v624_v62, %v765_v25  ;;  %v452_v7 = vrot.slane %v624_v62, %v768_v26 }
  0x63   : > { %v472_v4 = vsel %vm436_vm4, %v465_v63, 0.0  ;;  %v473_v20 = vsel %vm436_vm4, %v469_v1, 0.0  ;;  %v455_v5 = vsel %vm436_vm4, %v448_v2, 0.0  ;;  %v456_v19 = vsel %vm436_vm4, %v452_v7, 0.0 }
  0x64   : > { %v474_v6 = vadd.f32 %v473_v20, %v472_v4  ;;  %v457_v27 = vadd.f32 %v456_v19, %v455_v5 }
  0x66   : > { %475 = vadd.xlane.f32.xlu0 %v474_v6 }
  0x6a   : > { %458 = vadd.xlane.f32.xlu0 %v457_v27 }
  0xa8   : > { %v441_v25 = vpop.xlane.xlu1 %440 }
  0xf3   : > { %v476_v9 = vpop.xlane.xlu0 %475 }
  0xf4   : > { %v480_v26 = vsel %vm479_vm14, %v476_v9, 0.0 }
  0xf7   : > { %v459_v10 = vpop.xlane.xlu0 %458 }
  0xf8   : > { %v481_v11 = vsel %vm478_vm15, %v459_v10, %v480_v26 }
  0xf9   : > { %v482_v12 = vsel %vm477_vm0, %v441_v25, %v481_v11 }
  0xfa   : > { %483 = vst [vmem:[%s257_s29] sm:$0x1] %v482_v12 }
  0xfb PF: > { %s14_s14 = sadd.s32 1, %s693_s14   ;;  %s830_s12 = smov %s689_s13 }
  0xfc   : > { %p11_p5 = scmp.ge.s32.totalorder %s14_s14, 4   ;;  %s831_s13 = smov %s833_s15 }
  0xfe   :  { %13 = sbr.rel (!%p11_p5) target bundleno = 2 (0x2), region = 73 }

</bundles_post_ra>
